<compile_context>
chip_gen: v5e
topology: v5e:2x2
jax: 0.10.0
libtpu: 0.0.40
codegen_flags: <defaults>
</compile_context>

<pallas_src>
import functools

import jax
import jax.numpy as jnp
from jax import lax
from jax.experimental import pallas as pl
from jax.experimental.pallas import tpu as pltpu

_EPS = 1e-12  # F.normalize eps


def _model_kernel(seq_ref, w_ref, b_ref, recall_ref, out_ref, l_ref, u_sc,
                  *, r_valid, r_padded):
    """Single-pass tiled softmax retrieval head.

    grid = (n_recall_tiles,).  The query tower (mlp + L2 norm) runs once at
    j == 0 and is cached in VMEM scratch; every step computes one lane-dense
    (B, tile_r) tile of exp(cosine logits) and accumulates the row sum into the
    resident (B, 1) output block `l_ref`.
    """
    j = pl.program_id(0)
    tr = out_ref.shape[1]  # lane-dense recall tile width (multiple of 128)

    # ---- once, at the first grid step: query tower (mlp + L2 norm) ----
    @pl.when(j == 0)
    def _init():
        u = jnp.dot(seq_ref[...], w_ref[...], preferred_element_type=jnp.float32)
        u = u + b_ref[...]
        u_ssq = jnp.sum(u * u, axis=1, keepdims=True)
        # 1/max(||u||, eps) == rsqrt(max(||u||^2, eps^2)); rsqrt runs on the EUP.
        u_sc[...] = u * lax.rsqrt(jnp.maximum(u_ssq, _EPS * _EPS))
        l_ref[...] = jnp.zeros_like(l_ref)

    # ---- per-tile cosine logits: bf16 MXU matmul, (B, D) @ (D, TR) ----
    # recall_ref is already L2-normalized (done in the wrapper), so s is a
    # cosine similarity bounded in [-1, 1]: exp() needs no max subtraction.
    s = jnp.dot(u_sc[...].astype(jnp.bfloat16), recall_ref[...],
                preferred_element_type=jnp.float32)              # (B, TR)
    e = jnp.exp(s)

    if r_padded != r_valid:                                      # static check
        col = lax.broadcasted_iota(jnp.int32, (1, tr), 1) + j * tr
        e = jnp.where(col < r_valid, e, 0.0)                     # zero padding

    out_ref[...] = e
    l_ref[...] += jnp.sum(e, axis=1, keepdims=True)              # row softmax sum


def _round_up(x, m):
    return ((x + m - 1) // m) * m


def base_model_forward(input_ids, recall_items, item_emb, mlp_w, mlp_b,
                       number=0, seq_len=2, tile_r=2048):
    """BaseModel.forward: gathers / normalization prep (glue) in JAX, the
    mlp + logits + exp/softmax-sum fused in one single-pass Pallas kernel."""
    B = input_ids.shape[0]
    D = item_emb.shape[1]
    R = int(recall_items.shape[0])

    # Lane-dense recall tile: multiple of 128, capped by the padded problem size.
    tile_r = min(int(tile_r), _round_up(R, 128))
    rp = _round_up(R, tile_r)
    n_tiles = rp // tile_r

    # Pad the query batch to a multiple of 8 sublanes.
    bp = _round_up(B, 8)

    # --- glue: embedding gathers (kept in JAX) ---
    # TODO(synk): at production R, fuse the recall gather into the kernel DMA
    # (scalar-prefetched ids + manual row gather) to skip one HBM round trip.
    seq_feat = item_emb[input_ids[:, -seq_len:]].reshape(B, seq_len * D)
    seq_feat = seq_feat.astype(jnp.float32)
    if bp != B:
        seq_feat = jnp.pad(seq_feat, ((0, bp - B), (0, 0)))

    # Item tower: L2-normalize in f32, then cast to bf16 and transpose to the
    # lane-dense (D, Rp) layout the MXU wants as its RHS.
    # TODO(synk): int8 (v5e/v6e) / fp8 (v7x) recall rows with folded scales
    # would halve the dominant HBM stream if retrieval tolerance allows.
    v = item_emb[recall_items].astype(jnp.float32)
    v = v * lax.rsqrt(jnp.maximum(jnp.sum(v * v, axis=1, keepdims=True),
                                  _EPS * _EPS))
    recall_feat = v.T.astype(jnp.bfloat16)                       # (D, R)
    if rp != R:
        recall_feat = jnp.pad(recall_feat, ((0, 0), (0, rp - R)))

    kernel = functools.partial(_model_kernel, r_valid=R, r_padded=rp)

    exp_s, l = pl.pallas_call(
        kernel,
        out_shape=(jax.ShapeDtypeStruct((bp, rp), jnp.float32),
                   jax.ShapeDtypeStruct((bp, 1), jnp.float32)),
        grid_spec=pltpu.PrefetchScalarGridSpec(
            num_scalar_prefetch=0,
            grid=(n_tiles,),
            in_specs=[
                pl.BlockSpec((bp, seq_len * D), lambda j: (0, 0)),
                pl.BlockSpec((seq_len * D, D), lambda j: (0, 0)),
                pl.BlockSpec((1, D), lambda j: (0, 0)),
                pl.BlockSpec((D, tile_r), lambda j: (0, j)),
            ],
            out_specs=[
                pl.BlockSpec((bp, tile_r), lambda j: (0, j)),
                # Constant block index -> resident accumulator, flushed once.
                pl.BlockSpec((bp, 1), lambda j: (0, 0)),
            ],
            scratch_shapes=[
                pltpu.VMEM((bp, D), jnp.float32),  # normalized query embeds
            ],
        ),
        compiler_params=pltpu.CompilerParams(
            # The recall axis carries the l accumulator -> sequential.
            # TODO(synk): per-core partial sums (combined in the wrapper) would
            # let the recall axis go "parallel" across v7x's two TensorCores.
            dimension_semantics=("arbitrary",),
            vmem_limit_bytes=32 * 1024 * 1024,
        ),
    )(seq_feat, mlp_w.astype(jnp.float32),
      mlp_b.reshape(1, D).astype(jnp.float32), recall_feat)

    # Exact f32 softmax normalization + optional 1/t^2 adjustment (depends only
    # on the Python-int `number` and the column index) in the wrapper.
    probs = exp_s[:B, :R] / l[:B]
    if number != 0:
        t = jnp.arange(number, number + R, dtype=jnp.float32)
        probs = probs + 1.0 / (t * t)
    return probs


def _reference_forward(input_ids, recall_items, item_emb, mlp_w, mlp_b,
                       number=0, seq_len=2):
    """Pure-JAX f32 reference mirroring the PyTorch forward (eval mode)."""
    B = input_ids.shape[0]
    seq_feat = item_emb[input_ids[:, -seq_len:]].reshape(B, -1)
    u = seq_feat @ mlp_w + mlp_b
    u = u / jnp.maximum(jnp.linalg.norm(u, axis=1, keepdims=True), 1e-12)
    v = item_emb[recall_items]
    v = v / jnp.maximum(jnp.linalg.norm(v, axis=1, keepdims=True), 1e-12)
    logits = jax.nn.softmax(u @ v.T, axis=1)
    if number != 0:
        t = jnp.arange(number, number + logits.shape[1], dtype=jnp.float32)
        logits = logits + 1.0 / (t * t)
    return logits


if __name__ == "__main__":
    key = jax.random.PRNGKey(0)
    k_emb, k_w, k_ids, k_recall = jax.random.split(key, 4)

    # Model hyper-params implied by the module's __init__/forward.
    VOCAB = 64      # item_emb vocabulary size
    D = 32          # embedding dim == mlp output dim
    SEQ_LEN = 2     # self.seq_len
    B = 2           # batch of user sequences
    L = 8           # raw sequence length of input_ids
    R = 200         # number of recall items (exercises padding + 2 recall tiles)

    # Deterministic parameter init (mirrors reset_para):
    #   item_emb.weight ~ Normal(std=0.01); mlp weight ~ Xavier uniform; bias = 0
    item_emb = 0.01 * jax.random.normal(k_emb, (VOCAB, D), dtype=jnp.float32)
    fan_in, fan_out = SEQ_LEN * D, D
    limit = (6.0 / (fan_in + fan_out)) ** 0.5
    mlp_w = jax.random.uniform(k_w, (fan_in, fan_out), dtype=jnp.float32,
                               minval=-limit, maxval=limit)
    mlp_b = jnp.zeros((D,), dtype=jnp.float32)

    input_ids = jax.random.randint(k_ids, (B, L), 0, VOCAB, dtype=jnp.int32)
    recall_items = jax.random.randint(k_recall, (R,), 0, VOCAB, dtype=jnp.int32)

    number = 3  # exercise the 1/(t^2) branch too
    # tile_r=128 at this small R exercises the multi-tile + padded-column path.
    out = base_model_forward(input_ids, recall_items, item_emb, mlp_w, mlp_b,
                             number=number, seq_len=SEQ_LEN, tile_r=128)
    out = jax.block_until_ready(out)

    ref = _reference_forward(input_ids, recall_items, item_emb, mlp_w, mlp_b,
                             number=number, seq_len=SEQ_LEN)
    assert out.shape == (B, R)
    # bf16 MXU path -> compare with a bf16-level tolerance.
    max_err = float(jnp.max(jnp.abs(out - ref)))
    assert max_err < 5e-3, f"mismatch vs reference: max abs err {max_err}"

    print("KERNEL_OK")
</pallas_src>

<mosaic_0001>
module attributes {stable_mosaic.version = 11 : i64} {
  func.func @_model_kernel(%arg0: i32, %arg1: memref<8x64xf32, #tpu.memory_space<vmem>>, %arg2: memref<64x32xf32, #tpu.memory_space<vmem>>, %arg3: memref<1x32xf32, #tpu.memory_space<vmem>>, %arg4: memref<32x128xbf16, #tpu.memory_space<vmem>>, %arg5: memref<8x128xf32, #tpu.memory_space<vmem>>, %arg6: memref<8x1xf32, #tpu.memory_space<vmem>>, %arg7: memref<8x32xf32, #tpu.memory_space<vmem>>) attributes {dimension_semantics = [#tpu.dimension_semantics<arbitrary>], iteration_bounds = array<i64: 2>, scalar_prefetch = 0 : i64, scratch_operands = 1 : i64, tpu.core_type = #tpu.core_type<tc>, window_params = [{pipeline_mode = #tpu.pipeline_mode<synchronous>, transform_indices = @transform_0, window_bounds = array<i64: 8, 64>}, {pipeline_mode = #tpu.pipeline_mode<synchronous>, transform_indices = @transform_1, window_bounds = array<i64: 64, 32>}, {pipeline_mode = #tpu.pipeline_mode<synchronous>, transform_indices = @transform_2, window_bounds = array<i64: 1, 32>}, {transform_indices = @transform_3, window_bounds = array<i64: 32, 128>}, {transform_indices = @transform_4, window_bounds = array<i64: 8, 128>}, {pipeline_mode = #tpu.pipeline_mode<synchronous>, transform_indices = @transform_5, window_bounds = array<i64: 8, 1>}]} {
    %c0_i32 = arith.constant 0 : i32
    %0 = arith.cmpi eq, %arg0, %c0_i32 : i32
    %1 = arith.extui %0 : i1 to i32
    %c0_i32_0 = arith.constant 0 : i32
    %2 = arith.cmpi ne, %1, %c0_i32_0 : i32
    scf.if %2 {
      %c0_12 = arith.constant 0 : index
      %c0_13 = arith.constant 0 : index
      %24 = vector.load %arg1[%c0_12, %c0_13] : memref<8x64xf32, #tpu.memory_space<vmem>>, vector<8x64xf32>
      %c0_14 = arith.constant 0 : index
      %c0_15 = arith.constant 0 : index
      %25 = vector.load %arg2[%c0_14, %c0_15] : memref<64x32xf32, #tpu.memory_space<vmem>>, vector<64x32xf32>
      %cst_16 = arith.constant dense<0.000000e+00> : vector<8x32xf32>
      %26 = tpu.matmul %24, %25, %cst_16 {dimension_numbers = #tpu.dot_dimension_numbers<[1], [0], [0], [1], [0, 0, 1, 1], [], []>} : vector<8x64xf32>, vector<64x32xf32>, vector<8x32xf32> -> vector<8x32xf32>
      %c0_17 = arith.constant 0 : index
      %c0_18 = arith.constant 0 : index
      %27 = vector.load %arg3[%c0_17, %c0_18] : memref<1x32xf32, #tpu.memory_space<vmem>>, vector<1x32xf32>
      %28 = vector.broadcast %27 : vector<1x32xf32> to vector<8x32xf32>
      %29 = arith.addf %26, %28 : vector<8x32xf32>
      %30 = arith.mulf %29, %29 : vector<8x32xf32>
      %cst_19 = arith.constant dense<0.000000e+00> : vector<8xf32>
      %31 = vector.multi_reduction <add>, %30, %cst_19 [1] : vector<8x32xf32> to vector<8xf32>
      %32 = vector.shape_cast %31 : vector<8xf32> to vector<8x1xf32>
      %cst_20 = arith.constant 1.000000e-24 : f32
      %33 = vector.broadcast %cst_20 : f32 to vector<8x1xf32>
      %34 = arith.maximumf %32, %33 : vector<8x1xf32>
      %35 = math.rsqrt %34 : vector<8x1xf32>
      %36 = vector.broadcast %35 : vector<8x1xf32> to vector<8x32xf32>
      %37 = arith.mulf %29, %36 : vector<8x32xf32>
      %c0_21 = arith.constant 0 : index
      %c0_22 = arith.constant 0 : index
      %38 = vector.load %arg7[%c0_21, %c0_22] : memref<8x32xf32, #tpu.memory_space<vmem>>, vector<8x32xf32>
      tpu.vector_store %arg7[%c0_21, %c0_22], %37 {strides = array<i32>} : memref<8x32xf32, #tpu.memory_space<vmem>>, vector<8x32xf32>,
      %cst_23 = arith.constant 0.000000e+00 : f32
      %39 = vector.broadcast %cst_23 : f32 to vector<8x1xf32>
      %c0_24 = arith.constant 0 : index
      %c0_25 = arith.constant 0 : index
      %40 = vector.load %arg6[%c0_24, %c0_25] : memref<8x1xf32, #tpu.memory_space<vmem>>, vector<8x1xf32>
      tpu.vector_store %arg6[%c0_24, %c0_25], %39 {strides = array<i32>} : memref<8x1xf32, #tpu.memory_space<vmem>>, vector<8x1xf32>,
    } else {
    }
    %c0 = arith.constant 0 : index
    %c0_1 = arith.constant 0 : index
    %3 = vector.load %arg7[%c0, %c0_1] : memref<8x32xf32, #tpu.memory_space<vmem>>, vector<8x32xf32>
    %4 = arith.truncf %3 : vector<8x32xf32> to vector<8x32xbf16>
    %c0_2 = arith.constant 0 : index
    %c0_3 = arith.constant 0 : index
    %5 = vector.load %arg4[%c0_2, %c0_3] : memref<32x128xbf16, #tpu.memory_space<vmem>>, vector<32x128xbf16>
    %cst = arith.constant dense<0.000000e+00> : vector<8x128xf32>
    %6 = tpu.matmul %4, %5, %cst {dimension_numbers = #tpu.dot_dimension_numbers<[1], [0], [0], [1], [0, 0, 1, 1], [], []>} : vector<8x32xbf16>, vector<32x128xbf16>, vector<8x128xf32> -> vector<8x128xf32>
    %7 = math.exp %6 : vector<8x128xf32>
    %8 = tpu.iota {dimensions = array<i32: 1>} : vector<1x128xi32>
    %c128_i32 = arith.constant 128 : i32
    %9 = arith.muli %arg0, %c128_i32 : i32
    %10 = vector.broadcast %9 : i32 to vector<1x128xi32>
    %11 = arith.addi %8, %10 : vector<1x128xi32>
    %c200_i32 = arith.constant 200 : i32
    %12 = vector.broadcast %c200_i32 : i32 to vector<1x128xi32>
    %13 = arith.cmpi slt, %11, %12 : vector<1x128xi32>
    %cst_4 = arith.constant 0.000000e+00 : f32
    %14 = vector.shape_cast %13 : vector<1x128xi1> to vector<1x128xi1>
    %15 = vector.broadcast %14 : vector<1x128xi1> to vector<8x128xi1>
    %16 = vector.broadcast %cst_4 : f32 to vector<8x128xf32>
    %17 = arith.select %15, %7, %16 : vector<8x128xi1>, vector<8x128xf32>
    %c0_5 = arith.constant 0 : index
    %c0_6 = arith.constant 0 : index
    %18 = vector.load %arg5[%c0_5, %c0_6] : memref<8x128xf32, #tpu.memory_space<vmem>>, vector<8x128xf32>
    tpu.vector_store %arg5[%c0_5, %c0_6], %17 {strides = array<i32>} : memref<8x128xf32, #tpu.memory_space<vmem>>, vector<8x128xf32>,
    %c0_7 = arith.constant 0 : index
    %c0_8 = arith.constant 0 : index
    %19 = vector.load %arg6[%c0_7, %c0_8] : memref<8x1xf32, #tpu.memory_space<vmem>>, vector<8x1xf32>
    %cst_9 = arith.constant dense<0.000000e+00> : vector<8xf32>
    %20 = vector.multi_reduction <add>, %17, %cst_9 [1] : vector<8x128xf32> to vector<8xf32>
    %21 = vector.shape_cast %20 : vector<8xf32> to vector<8x1xf32>
    %22 = arith.addf %19, %21 : vector<8x1xf32>
    %c0_10 = arith.constant 0 : index
    %c0_11 = arith.constant 0 : index
    %23 = vector.load %arg6[%c0_10, %c0_11] : memref<8x1xf32, #tpu.memory_space<vmem>>, vector<8x1xf32>
    tpu.vector_store %arg6[%c0_10, %c0_11], %22 {strides = array<i32>} : memref<8x1xf32, #tpu.memory_space<vmem>>, vector<8x1xf32>,
    return
  }
  func.func @transform_0(%arg0: i32) -> (i32, i32) {
    %c0_i32 = arith.constant 0 : i32
    %c0_i32_0 = arith.constant 0 : i32
    %c0_i32_1 = arith.constant 0 : i32
    return %c0_i32, %c0_i32_0 : i32, i32
  }
  func.func @transform_1(%arg0: i32) -> (i32, i32) {
    %c0_i32 = arith.constant 0 : i32
    %c0_i32_0 = arith.constant 0 : i32
    %c0_i32_1 = arith.constant 0 : i32
    return %c0_i32, %c0_i32_0 : i32, i32
  }
  func.func @transform_2(%arg0: i32) -> (i32, i32) {
    %c0_i32 = arith.constant 0 : i32
    %c0_i32_0 = arith.constant 0 : i32
    %c0_i32_1 = arith.constant 0 : i32
    return %c0_i32, %c0_i32_0 : i32, i32
  }
  func.func @transform_3(%arg0: i32) -> (i32, i32) {
    %c0_i32 = arith.constant 0 : i32
    %c0_i32_0 = arith.constant 0 : i32
    return %c0_i32, %arg0 : i32, i32
  }
  func.func @transform_4(%arg0: i32) -> (i32, i32) {
    %c0_i32 = arith.constant 0 : i32
    %c0_i32_0 = arith.constant 0 : i32
    return %c0_i32, %arg0 : i32, i32
  }
  func.func @transform_5(%arg0: i32) -> (i32, i32) {
    %c0_i32 = arith.constant 0 : i32
    %c0_i32_0 = arith.constant 0 : i32
    %c0_i32_1 = arith.constant 0 : i32
    return %c0_i32, %c0_i32_0 : i32, i32
  }
}

</mosaic_0001>

<bundles_post_ra>
// kernel: tpu_custom_call.1
= control target key start
LH: loop header
LB: loop body
LE: loop exit
PB: predicated region body
PF: predicated region fallthrough
CT: control target
= control target key end

     0   :  { %11 = vsyncpa [#allocation5], 0  ;;  %s790_s0 = inlined_call_operand.vmem [shape: f32[8,64], index: 0, kind: input, shape index: {}]   ;;  %s791_s1 = inlined_call_operand.vmem [shape: f32[64,32], index: 1, kind: input, shape index: {}]   ;;  %s792_s2 = inlined_call_operand.vmem [shape: f32[1,32], index: 2, kind: input, shape index: {}]   ;;  %s793_s3 = inlined_call_operand.vmem [shape: bf16[32,256], index: 3, kind: input, shape index: {}]   ;;  %s794_s4 = inlined_call_operand.hbm [shape: f32[8,256], index: 4, kind: output, shape index: {0}]   ;;  %s795_s5 = inlined_call_operand.vmem [shape: f32[8,1], index: 5, kind: output, shape index: {1}]  }
   0x1   :  { %13 = vsyncpa [#allocation5 + $0x1], 0  ;;  %s644_s18 = smov 0   ;;  %s646_s19 = smov 0  }
   0x2   :  { %s648_s20 = smov 0   ;;  %s650_s21 = smov 0  }
   0x3 LB: > { %s665_s22 = sadd.s32 4294967295, %s611_s21   ;;  %s478_s23 = sadd.s32 4294967294, %s611_s21   ;;  %s611_s21 = sphi %s650_s21, %s801_s21   ;;  %s607_s20 = sphi %s648_s20, %s800_s20   ;;  %s603_s19 = sphi %s646_s19, %s799_s19   ;;  %s599_s18 = sphi %s644_s18, %s798_s18  }
   0x4   : > { %s669_s24 = sadd.s32 1, %s611_s21   ;;  %s89_s25 = sadd.s32 1, %s607_s20 }
   0x5   : > { %s86_s26 = ssub.s32 %s611_s21, %s669_s24  ;;  %p96_p0 = scmp.ne.s32.totalorder %s607_s20, %s603_s19 }
   0x6   : > { %p87_p1 = scmp.eq.s32.totalorder %s86_s26, 0  ;;  %p97_p2 = scmp.eq.s32.totalorder %s611_s21, 0 }
   0x7   : > { %p126_p3 = scmp.eq.s32.totalorder %s665_s22, 1  ;;  %p131_p4 = scmp.ne.s32.totalorder %s603_s19, %s599_s18 }
   0x8   : > { %s681_s27 = scalar_select %p87_p1, %s607_s20, %s89_s25  }
   0x9   : > { %p98_p5 = por %p97_p2, %p96_p0  ;;  %p683_p6 = por %p126_p3, %p96_p0 }
   0xa   : > { %p132_p7 = scmp.eq.s32.totalorder %s478_s23, 1  ;;  %p480_p9 = scmp.ge.s32.totalorder %s611_s21, 2 }
   0xc   : > { %p687_p8 = por %p132_p7, %p131_p4  ;;  %178 = sbr.rel (%p480_p9) target bundleno = 25 (0x19), region = 28 }
  0x11   : > { %181 = sbr.rel (!%p98_p5) target bundleno = 25 (0x19), region = 32  ;;  %s183_s30 = sand.u32 (%p98_p5), 1, %s607_s20  }
  0x12   : > { %s482_s6 = sshll.u32 (%p98_p5), %s611_s21, 2  ;;  %s481_s7 = sshll.u32 (%p98_p5), %s183_s30, 4 }
  0x13   : > { %s187_s10 = scalar_lea.vmem (%p98_p5), %s793_s3, %s482_s6  ;;  %s185_s11 = scalar_lea.vmem (%p98_p5), [#allocation3], %s481_s7 }
  0x14   : > { %v204_v0 = vld [vmem:[%s187_s10] sm:$0xf] (%p98_p5)  ;;  %v206_v1 = vld [vmem:[%s187_s10 + $0x8] sm:$0xf] (%p98_p5)  ;;  %v208_v2 = vld [vmem:[%s187_s10 + $0x10] sm:$0xf] (%p98_p5) }
  0x15   : > { %205 = vst [vmem:[%s185_s11] sm:$0xf] (%p98_p5), %v204_v0  ;;  %v210_v3 = vld [vmem:[%s187_s10 + $0x18] sm:$0xf] (%p98_p5) }
  0x16   : > { %207 = vst [vmem:[%s185_s11 + $0x4] sm:$0xf] %v206_v1 }
  0x17   : > { %209 = vst [vmem:[%s185_s11 + $0x8] sm:$0xf] %v208_v2 }
  0x18   : > { %211 = vst [vmem:[%s185_s11 + $0xc] sm:$0xf] %v210_v3 }
  0x19 PF: > { %p483_p10 = scmp.ge.s32.totalorder %s611_s21, 1  ;;  %p242_p11 = scmp.lt.s32.totalorder %s611_s21, 3 }
  0x1b   : > { %p243_p12 = pnand %p483_p10, %p242_p11 }
  0x1c   : > { %s702_s12 = sand.u32 (!%p243_p12), 1, %s603_s19   ;;  %p486_p13 = scmp.ne.s32.totalorder (!%p243_p12), %s665_s22, 0 }
  0x1d   : > { %246 = sbr.rel (%p243_p12) target bundleno = 589 (0x24d), region = 73  ;;  %s484_s13 = sshll.u32 (!%p243_p12), %s702_s12, 4 }
  0x1e   : > { %s485_s14 = sshll.u32 (!%p243_p12), %s702_s12, 3  ;;  %s706_s15 = scalar_lea.vmem (!%p243_p12), [#allocation3], %s484_s13 }
  0x1f   : > { %s708_s16 = scalar_lea.vmem (!%p243_p12), [#allocation4], %s485_s14 }
  0x22   : > { %280 = sbr.rel (%p486_p13) target bundleno = 325 (0x145), region = 81 }
  0x27   : > { %v289_v4 = vld [vmem:[%s791_s1 + $0x38] sm:$0xff]  ;;  %v288_v5 = vld [vmem:[%s791_s1 + $0x30] sm:$0xff]  ;;  %v287_v6 = vld [vmem:[%s791_s1 + $0x28] sm:$0xff]  ;;  %vm294_vm0 = vcmask 523264   ;;  %vm319_vm1 = vcmask 261120   ;;  %vm336_vm2 = vcmask 7168  }
  0x28   : > { %306 = vmatpush.msra.mxu0 %v289_v4  ;;  %v286_v7 = vld [vmem:[%s791_s1 + $0x20] sm:$0xff]  ;;  %v285_v8 = vld [vmem:[%s791_s1 + $0x18] sm:$0xff]  ;;  %v284_v9 = vld [vmem:[%s791_s1 + $0x10] sm:$0xff]  ;;  %v613_v18 = vmov 0.0  }
  0x29   : > { %v283_v10 = vld [vmem:[%s791_s1 + $0x8] sm:$0xff]  ;;  %v282_v11 = vld [vmem:[%s791_s1] sm:$0xff]  ;;  %337 = vst.msk [vmem:[%s795_s5] sm:$0xff] %vm336_vm2, %v613_v18 }
  0x2a   : > { %307 = vmatpush.msra.mxu0 %v288_v5  ;;  %v281_v12 = vld [vmem:[%s790_s0] sm:$0xff] }
  0x2b   : > { %v544_v13 = vld [vmem:[%s792_s2] ss:$0 sm:$0xff] }
  0x2c   : > { %308 = vmatpush.msra.mxu0 %v287_v6 }
  0x2e   : > { %309 = vmatpush.msra.mxu0 %v286_v7 }
  0x30   : > { %310 = vmatpush.msra.mxu0 %v285_v8 }
  0x32   : > { %311 = vmatpush.msra.mxu0 %v284_v9 }
  0x34   : > { %312 = vmatpush.msra.mxu0 %v283_v10 }
  0x36   : > { %313 = vmatpush.msra.mxu0 %v282_v11 }
  0x37   : > { %487 = vmatmul.msk.f32.vlgmr.msra.gmra.mxu0 %vm294_vm0, %v281_v12 }
  0xb4   : > { %v315_v14 = vpop.f32.mrf.mxu0 }
  0xb5   : > { %v316_v15 = vadd.f32 %v544_v13, %v315_v14 }
  0xb7   : > { %v318_v16 = vmul.f32 %v316_v15, %v316_v15 }
  0xb9   : > { %v320_v17 = vsel %vm319_vm1, %v318_v16, 0.0 }
  0xba   : > { %321 = vadd.xlane.f32.xlu0 %v320_v17 }
 0x12d   : > { %v322_v19 = vpop.xlane.xlu0 %321 }
 0x12e   : > { %v323_v20 = vmax.f32 %v322_v19, 1e-24 }
 0x130   : > { %545 = vrsqrt.f32 %v323_v20  ;;  %vm330_vm4 = vweird.f32 %v323_v20 }
 0x136   : > { %v546_v21 = vpop.eup %545 }
 0x137   : > { %v325_v22 = vmul.f32 %v546_v21, %v323_v20  ;;  %vm331_vm3 = vweird.f32 %v546_v21 }
 0x138   : > { %vm332_vm5 = vmor %vm330_vm4, %vm331_vm3 }
 0x139   : > { %v326_v23 = vmul.f32 %v546_v21, %v325_v22 }
 0x13b   : > { %v327_v24 = vmul.f32 0.5, %v326_v23 }
 0x13d   : > { %v328_v25 = vsub.f32 1.5, %v327_v24 }
 0x13f   : > { %v329_v26 = vmul.f32 %v546_v21, %v328_v25 }
 0x141   : > { %v333_v27 = vsel %vm332_vm5, %v546_v21, %v329_v26 }
 0x142   : > { %v334_v28 = vmul.f32 %v333_v27, %v316_v15 }
 0x144   : > { %335 = vst.msk [vmem:[#allocation2] sm:$0xff] %vm319_vm1, %v334_v28 }
 0x145 PF: > { %v503_v29 = vld [vmem:[%s706_s15 + $0x8] sm:$0xff]  ;;  %v502_v30 = vld [vmem:[%s706_s15] sm:$0xff]  ;;  %vm356_vm6 = vcmask 261120   ;;  %v375_v33 = vlaneseq  ;;  %s497_s10 = sshll.u32 %s665_s22, 7  ;;  %s499_s11 = sshll.u32 %s665_s22, 3 }
 0x146   : > { %366 = vmatpush.bf16.msra.mxu0 %v503_v29  ;;  %v378_v36 = vstv %s497_s10  ;;  %s402_s15 = scalar_lea.hbm %s794_s4, %s499_s11  ;;  %s404_s17 = sshll.u32 %s708_s16, 4  ;;  %s405_s17 = int_to_ptr.vmem [resolvable:$true] %s404_s17 }
 0x147   : > { %v376_v34 = vand.u32 127, %v375_v33  ;;  %s406_s23 = sshll.u32 %s402_s15, 4  ;;  %s392_s25 = scalar_lea.sflag [#allocation5], %s702_s12  ;;  %s407_s23 = int_to_ptr.hbm [resolvable:$true] %s406_s23 }
 0x148   : > { %s563_s22 = sshra.s32 %s407_s23, 4  ;;  %s569_s7 = scalar_lea.hbm %s794_s4, 16  ;;  %s564_s22 = int_to_ptr.hbm [resolvable:$true] %s563_s22 }
 0x149   : > { %v379_v38 = vadd.s32 %v378_v36, %v376_v34  ;;  %s565_s26 = scalar_lea.hbm %s564_s22, 8  ;;  %p570_p3 = scmp.lt.s32.totalorder %s564_s22, %s794_s4 }
 0x14a   : > { %367 = vmatpush.bf16.msra.mxu0 %v502_v30  ;;  %p566_p0 = scmp.ne.s32.totalorder %s564_s22, %s565_s26  ;;  %p571_p4 = scmp.lt.s32.totalorder %s569_s7, %s565_s26 }
 0x14b   : > { %v338_v31 = vld [vmem:[#allocation2] sm:$0xff]  ;;  %vm380_vm7 = vcmp.lt.s32.totalorder %v379_v38, 200 }
 0x14c   : > { %v339_v32 = vpack.c.bf16 %v338_v31, %v338_v31  ;;  %p567_p1 = pnand %p566_p0, %p683_p6  ;;  %p572_p5 = por %p571_p4, %p570_p3 }
 0x14e   : > { %496 = vmatmul.msk.bf16.vlgmr.msra.gmra.mxu0 %vm356_vm6, %v339_v32  ;;  %p568_p2 = pneg %p567_p1 }
 0x150   : > { %p573_p7 = pnand %p572_p5, %p568_p2 }
 0x1cb   : > { %v369_v35 = vpop.f32.mrf.mxu0 }
 0x1cc   : > { %v373_v37 = vmul.f32 1.442695, %v369_v35 }
 0x1ce   : > { %547 = vpow2.f32 %v373_v37 }
 0x1d3   : > { %v371_v39 = vpop.f32.mrf.mxu0 }
 0x1d4   : > { %v548_v40 = vpop.eup %547 }
 0x1d5   : > { %v383_v41 = vsel %vm380_vm7, %v548_v40, 0.0 }
 0x1d6   : > { %384 = vst [vmem:[%s708_s16] sm:$0xff] %v383_v41  ;;  %386 = vadd.xlane.f32.xlu0 %v383_v41 }
 0x1d7   : > { %576 = shalt.err (!%p573_p7)
}
 0x1d8   : > { %504 = dma.vmem_to_hbm [thread:$0]  (%p683_p6), %s405_s17, 128, %s407_s23, %s392_s25   ;;  %v385_v42 = vld [vmem:[%s795_s5] sm:$0xff]  ;;  %vm389_vm8 = vcmask 7168  }
 0x249   : > { %v387_v43 = vpop.xlane.xlu0 %386 }
 0x24a   : > { %v388_v44 = vadd.f32 %v387_v43, %v385_v42 }
 0x24c   : > { %390 = vst.msk [vmem:[%s795_s5] sm:$0xff] %vm389_vm8, %v388_v44 }
 0x24d PF: > { %s424_s13 = sand.u32 1, %s599_s18   ;;  %p507_p10 = pnand %p480_p9, %p687_p8 }
 0x24e   : > { %s425_s28 = scalar_lea.sflag [#allocation5], %s424_s13 }
 0x24f   : > { %p508_p6 = pneg %p507_p10 }
 0x251   : > { %594 = dma.done.wait (%p508_p6), %s425_s28, 128  }
 0x252   : > { %596 = vsyncadd (%p508_p6), %s425_s28, 4294967168  ;;  %p16_p11 = scmp.ge.s32.totalorder %s669_s24, 4   ;;  %s798_s18 = smov %s603_s19 }
 0x253   : > { %s799_s19 = smov %s607_s20  ;;  %s800_s20 = smov %s681_s27 }
 0x254   : > { %s801_s21 = smov %s669_s24  ;;  %18 = sbr.rel (!%p16_p11) target bundleno = 3 (0x3), region = 129 }
 0x259   :  { %431 = vsyncpa [#allocation5], 1 }
 0x25a   :  { %433 = vsyncpa [#allocation5 + $0x1], 1 }

</bundles_post_ra>
